<compile_context>
chip_gen: v7x
topology: tpu7x:2x2x1
jax: 0.10.0
libtpu: 0.0.40
codegen_flags: <defaults>
</compile_context>

<pallas_src>
import functools

import jax
import jax.numpy as jnp
from jax.experimental import pallas as pl
from jax.experimental.pallas import tpu as pltpu

EPS = 1e-3


def conv_bn_relu_kernel(x_ref, w_ref, gamma_ref, beta_ref, mask_ref, out_ref, patch_ref,
                        *, kh, kw, wp, cin_p, inv_count):
    """Fused conv (in-kernel im2col, single MXU dot) + training-mode BN + ReLU.

    x_ref:     [Cin_p, Lin_pad]            bf16  padded input, flattened (n, hp, wp) on lanes
    w_ref:     [Cout, kh*kw*Cin_p]         bf16  stacked per-tap weight matrix
    gamma_ref: [Cout, 1]                   f32
    beta_ref:  [Cout, 1]                   f32
    mask_ref:  [1, Mcols]                  f32   1.0 at valid (in-bounds, stride-aligned) cols
    out_ref:   [Cout, Mcols]               bf16  Mcols is 128-aligned
    patch_ref: [kh*kw*Cin_p, Mcols]        bf16  VMEM scratch (im2col slab)
    """
    _, mcols = out_ref.shape

    # ---- in-kernel im2col: each lane-shifted window lands on a tile-aligned row block ----
    for ki in range(kh):
        for kj in range(kw):
            t = ki * kw + kj
            patch_ref[pl.ds(t * cin_p, cin_p), :] = x_ref[:, pl.ds(ki * wp + kj, mcols)]

    # ---- conv: one stacked MXU matmul, K = kh*kw*Cin_p, f32 accumulation ----
    acc = jnp.dot(w_ref[...], patch_ref[...],
                  preferred_element_type=jnp.float32)          # [Cout, Mcols] f32

    # ---- BN statistics: masked, centered two-pass (better precision, same op count) ----
    # (f32 epilogue on purpose: v5e has no bf16 VPU/EUP path.)
    mask = mask_ref[...]                                       # [1, Mcols]
    mean = jnp.sum(acc * mask, axis=1, keepdims=True) * inv_count   # [Cout, 1]
    d = acc - mean                                             # reused in the BN FMA below
    var = jnp.sum((d * d) * mask, axis=1, keepdims=True) * inv_count

    # ---- fold BN into per-channel scale/bias, ReLU, lane-dense bf16 store ----
    scale = gamma_ref[...] * jax.lax.rsqrt(var + EPS)          # EUP rsqrt, [Cout, 1]
    out_ref[...] = jnp.maximum(d * scale + beta_ref[...], 0.0).astype(out_ref.dtype)


def basic_conv2d(x, weight, gamma, beta, *, stride=1, padding=1):
    """Fused Conv2d(bias=False) + BatchNorm2d(eps=1e-3, training) + ReLU.

    x:      [N, Cin, H, W]       (NCHW, as in PyTorch)
    weight: [Cout, Cin, kh, kw]  (PyTorch Conv2d weight layout)
    gamma:  [Cout]  BN weight
    beta:   [Cout]  BN bias
    returns [N, Cout, Ho, Wo]    (NCHW)
    """
    N, Cin, H, W = x.shape
    Cout, _, kh, kw = weight.shape
    Hp, Wp = H + 2 * padding, W + 2 * padding
    Ho = (Hp - kh) // stride + 1
    Wo = (Wp - kw) // stride + 1

    LANES = 128
    PACK = 16                                   # bf16 sublane packing (tile = (16, 128))
    cin_p = ((Cin + PACK - 1) // PACK) * PACK   # tile-aligned channel rows in the scratch

    mcols = N * Hp * Wp
    mcols_pad = ((mcols + LANES - 1) // LANES) * LANES          # lane-dense output width
    lin = mcols_pad + (kh - 1) * Wp + (kw - 1)                  # every tap slice in-bounds
    lin_pad = ((lin + LANES - 1) // LANES) * LANES

    # --- glue: pad + flatten input into a lane-major [Cin_p, Lin_pad] bf16 slab ---
    xp = jnp.pad(x, ((0, 0), (0, 0), (padding, padding), (padding, padding)))
    xflat = jnp.transpose(xp, (1, 0, 2, 3)).reshape(Cin, mcols)
    xflat = jnp.pad(xflat, ((0, cin_p - Cin), (0, lin_pad - mcols))).astype(jnp.bfloat16)

    # --- weight as a single stacked matrix [Cout, kh*kw*Cin_p], row order (tap, channel) ---
    wt = jnp.transpose(weight, (0, 2, 3, 1))                    # [Cout, kh, kw, Cin]
    wt = jnp.pad(wt, ((0, 0), (0, 0), (0, 0), (0, cin_p - Cin)))
    w2d = wt.reshape(Cout, kh * kw * cin_p).astype(jnp.bfloat16)

    # --- validity mask over flattened columns (in-bounds, stride-aligned, < mcols) ---
    hp = jnp.arange(Hp)
    wpi = jnp.arange(Wp)
    row_ok = (hp % stride == 0) & (hp // stride < Ho)
    col_ok = (wpi % stride == 0) & (wpi // stride < Wo)
    valid = row_ok[:, None] & col_ok[None, :]                   # [Hp, Wp]
    mask = jnp.broadcast_to(valid[None], (N, Hp, Wp)).reshape(1, mcols)
    mask = jnp.pad(mask, ((0, 0), (0, mcols_pad - mcols))).astype(jnp.float32)

    kern = functools.partial(conv_bn_relu_kernel, kh=kh, kw=kw, wp=Wp, cin_p=cin_p,
                             inv_count=1.0 / float(N * Ho * Wo))

    # --- hot path: one grid-less pallas_call, everything resident in VMEM (< 1 MiB) ---
    out2d = pl.pallas_call(
        kern,
        out_shape=jax.ShapeDtypeStruct((Cout, mcols_pad), jnp.bfloat16),
        in_specs=[
            pl.BlockSpec(memory_space=pltpu.MemorySpace.VMEM),  # xflat
            pl.BlockSpec(memory_space=pltpu.MemorySpace.VMEM),  # w2d
            pl.BlockSpec(memory_space=pltpu.MemorySpace.VMEM),  # gamma
            pl.BlockSpec(memory_space=pltpu.MemorySpace.VMEM),  # beta
            pl.BlockSpec(memory_space=pltpu.MemorySpace.VMEM),  # mask
        ],
        out_specs=pl.BlockSpec(memory_space=pltpu.MemorySpace.VMEM),
        scratch_shapes=[pltpu.VMEM((kh * kw * cin_p, mcols_pad), jnp.bfloat16)],
    )(xflat, w2d,
      gamma.reshape(Cout, 1).astype(jnp.float32),
      beta.reshape(Cout, 1).astype(jnp.float32),
      mask)

    # --- glue: pick out the valid (strided) output positions, back to NCHW ---
    # TODO(synk): lay the kernel output N-major to drop this final transpose (item 5).
    y = out2d[:, :mcols].reshape(Cout, N, Hp, Wp)
    y = y[:, :, 0:Ho * stride:stride, 0:Wo * stride:stride]     # [Cout, N, Ho, Wo]
    return jnp.transpose(y, (1, 0, 2, 3)).astype(x.dtype)       # [N, Cout, Ho, Wo]


def _reference(x, weight, gamma, beta, *, stride=1, padding=1):
    """Pure-JAX f32 reference: conv -> training-mode BN -> ReLU."""
    y = jax.lax.conv_general_dilated(
        x, weight, window_strides=(stride, stride),
        padding=[(padding, padding), (padding, padding)],
        dimension_numbers=("NCHW", "OIHW", "NCHW"))
    mean = jnp.mean(y, axis=(0, 2, 3), keepdims=True)
    var = jnp.mean(jnp.square(y - mean), axis=(0, 2, 3), keepdims=True)
    y = (y - mean) * jax.lax.rsqrt(var + EPS)
    y = y * gamma.reshape(1, -1, 1, 1) + beta.reshape(1, -1, 1, 1)
    return jnp.maximum(y, 0.0)


if __name__ == "__main__":
    key = jax.random.PRNGKey(0)
    k_x, k_w, k_g, k_b = jax.random.split(key, 4)

    # BasicConv2d(in_channels=4, out_channels=8, kernel_size=3, padding=1)
    N, Cin, H, W = 2, 4, 16, 16
    Cout, kh, kw = 8, 3, 3

    x = jax.random.normal(k_x, (N, Cin, H, W), dtype=jnp.float32)
    weight = jax.random.normal(k_w, (Cout, Cin, kh, kw), dtype=jnp.float32) * 0.1
    gamma = 1.0 + 0.1 * jax.random.normal(k_g, (Cout,), dtype=jnp.float32)
    beta = 0.1 * jax.random.normal(k_b, (Cout,), dtype=jnp.float32)

    out = basic_conv2d(x, weight, gamma, beta, stride=1, padding=1)
    out = jax.block_until_ready(out)

    ref = jax.block_until_ready(_reference(x, weight, gamma, beta, stride=1, padding=1))
    assert out.shape == (N, Cout, H, W), out.shape
    # bf16 MXU operands + bf16 store (f32 accumulation / epilogue) -> bf16-level tolerance
    # against the f32 reference.
    max_err = float(jnp.max(jnp.abs(out - ref)))
    assert jnp.allclose(out, ref, atol=3e-2, rtol=3e-2), max_err

    print("KERNEL_OK")
</pallas_src>

<mosaic_0001>
module attributes {stable_mosaic.version = 11 : i64} {
  func.func @conv_bn_relu_kernel(%arg0: memref<16x896xbf16, #tpu.memory_space<vmem>>, %arg1: memref<8x144xbf16, #tpu.memory_space<vmem>>, %arg2: memref<8x1xf32, #tpu.memory_space<vmem>>, %arg3: memref<8x1xf32, #tpu.memory_space<vmem>>, %arg4: memref<1x768xf32, #tpu.memory_space<vmem>>, %arg5: memref<8x768xbf16, #tpu.memory_space<vmem>>, %arg6: memref<144x768xbf16, #tpu.memory_space<vmem>>) attributes {dimension_semantics = [], scalar_prefetch = 0 : i64, scratch_operands = 1 : i64, tpu.core_type = #tpu.core_type<tc>} {
    %c0 = arith.constant 0 : index
    %c0_0 = arith.constant 0 : index
    %0 = vector.load %arg0[%c0, %c0_0] : memref<16x896xbf16, #tpu.memory_space<vmem>>, vector<16x768xbf16>
    %c0_1 = arith.constant 0 : index
    %c0_2 = arith.constant 0 : index
    %1 = vector.load %arg6[%c0_1, %c0_2] : memref<144x768xbf16, #tpu.memory_space<vmem>>, vector<16x768xbf16>
    tpu.vector_store %arg6[%c0_1, %c0_2], %0 {strides = array<i32>} : memref<144x768xbf16, #tpu.memory_space<vmem>>, vector<16x768xbf16>,
    %c0_3 = arith.constant 0 : index
    %c1 = arith.constant 1 : index
    %2 = vector.load %arg0[%c0_3, %c1] : memref<16x896xbf16, #tpu.memory_space<vmem>>, vector<16x768xbf16>
    %c16 = arith.constant 16 : index
    %c0_4 = arith.constant 0 : index
    %3 = vector.load %arg6[%c16, %c0_4] : memref<144x768xbf16, #tpu.memory_space<vmem>>, vector<16x768xbf16>
    tpu.vector_store %arg6[%c16, %c0_4], %2 {strides = array<i32>} : memref<144x768xbf16, #tpu.memory_space<vmem>>, vector<16x768xbf16>,
    %c0_5 = arith.constant 0 : index
    %c2 = arith.constant 2 : index
    %4 = vector.load %arg0[%c0_5, %c2] : memref<16x896xbf16, #tpu.memory_space<vmem>>, vector<16x768xbf16>
    %c32 = arith.constant 32 : index
    %c0_6 = arith.constant 0 : index
    %5 = vector.load %arg6[%c32, %c0_6] : memref<144x768xbf16, #tpu.memory_space<vmem>>, vector<16x768xbf16>
    tpu.vector_store %arg6[%c32, %c0_6], %4 {strides = array<i32>} : memref<144x768xbf16, #tpu.memory_space<vmem>>, vector<16x768xbf16>,
    %c0_7 = arith.constant 0 : index
    %c18 = arith.constant 18 : index
    %6 = vector.load %arg0[%c0_7, %c18] : memref<16x896xbf16, #tpu.memory_space<vmem>>, vector<16x768xbf16>
    %c48 = arith.constant 48 : index
    %c0_8 = arith.constant 0 : index
    %7 = vector.load %arg6[%c48, %c0_8] : memref<144x768xbf16, #tpu.memory_space<vmem>>, vector<16x768xbf16>
    tpu.vector_store %arg6[%c48, %c0_8], %6 {strides = array<i32>} : memref<144x768xbf16, #tpu.memory_space<vmem>>, vector<16x768xbf16>,
    %c0_9 = arith.constant 0 : index
    %c19 = arith.constant 19 : index
    %8 = vector.load %arg0[%c0_9, %c19] : memref<16x896xbf16, #tpu.memory_space<vmem>>, vector<16x768xbf16>
    %c64 = arith.constant 64 : index
    %c0_10 = arith.constant 0 : index
    %9 = vector.load %arg6[%c64, %c0_10] : memref<144x768xbf16, #tpu.memory_space<vmem>>, vector<16x768xbf16>
    tpu.vector_store %arg6[%c64, %c0_10], %8 {strides = array<i32>} : memref<144x768xbf16, #tpu.memory_space<vmem>>, vector<16x768xbf16>,
    %c0_11 = arith.constant 0 : index
    %c20 = arith.constant 20 : index
    %10 = vector.load %arg0[%c0_11, %c20] : memref<16x896xbf16, #tpu.memory_space<vmem>>, vector<16x768xbf16>
    %c80 = arith.constant 80 : index
    %c0_12 = arith.constant 0 : index
    %11 = vector.load %arg6[%c80, %c0_12] : memref<144x768xbf16, #tpu.memory_space<vmem>>, vector<16x768xbf16>
    tpu.vector_store %arg6[%c80, %c0_12], %10 {strides = array<i32>} : memref<144x768xbf16, #tpu.memory_space<vmem>>, vector<16x768xbf16>,
    %c0_13 = arith.constant 0 : index
    %c36 = arith.constant 36 : index
    %12 = vector.load %arg0[%c0_13, %c36] : memref<16x896xbf16, #tpu.memory_space<vmem>>, vector<16x768xbf16>
    %c96 = arith.constant 96 : index
    %c0_14 = arith.constant 0 : index
    %13 = vector.load %arg6[%c96, %c0_14] : memref<144x768xbf16, #tpu.memory_space<vmem>>, vector<16x768xbf16>
    tpu.vector_store %arg6[%c96, %c0_14], %12 {strides = array<i32>} : memref<144x768xbf16, #tpu.memory_space<vmem>>, vector<16x768xbf16>,
    %c0_15 = arith.constant 0 : index
    %c37 = arith.constant 37 : index
    %14 = vector.load %arg0[%c0_15, %c37] : memref<16x896xbf16, #tpu.memory_space<vmem>>, vector<16x768xbf16>
    %c112 = arith.constant 112 : index
    %c0_16 = arith.constant 0 : index
    %15 = vector.load %arg6[%c112, %c0_16] : memref<144x768xbf16, #tpu.memory_space<vmem>>, vector<16x768xbf16>
    tpu.vector_store %arg6[%c112, %c0_16], %14 {strides = array<i32>} : memref<144x768xbf16, #tpu.memory_space<vmem>>, vector<16x768xbf16>,
    %c0_17 = arith.constant 0 : index
    %c38 = arith.constant 38 : index
    %16 = vector.load %arg0[%c0_17, %c38] : memref<16x896xbf16, #tpu.memory_space<vmem>>, vector<16x768xbf16>
    %c128 = arith.constant 128 : index
    %c0_18 = arith.constant 0 : index
    %17 = vector.load %arg6[%c128, %c0_18] : memref<144x768xbf16, #tpu.memory_space<vmem>>, vector<16x768xbf16>
    tpu.vector_store %arg6[%c128, %c0_18], %16 {strides = array<i32>} : memref<144x768xbf16, #tpu.memory_space<vmem>>, vector<16x768xbf16>,
    %c0_19 = arith.constant 0 : index
    %c0_20 = arith.constant 0 : index
    %18 = vector.load %arg1[%c0_19, %c0_20] : memref<8x144xbf16, #tpu.memory_space<vmem>>, vector<8x144xbf16>
    %c0_21 = arith.constant 0 : index
    %c0_22 = arith.constant 0 : index
    %19 = vector.load %arg6[%c0_21, %c0_22] : memref<144x768xbf16, #tpu.memory_space<vmem>>, vector<144x768xbf16>
    %cst = arith.constant dense<0.000000e+00> : vector<8x768xf32>
    %20 = tpu.matmul %18, %19, %cst {dimension_numbers = #tpu.dot_dimension_numbers<[1], [0], [0], [1], [0, 0, 1, 1], [], []>} : vector<8x144xbf16>, vector<144x768xbf16>, vector<8x768xf32> -> vector<8x768xf32>
    %c0_23 = arith.constant 0 : index
    %c0_24 = arith.constant 0 : index
    %21 = vector.load %arg4[%c0_23, %c0_24] : memref<1x768xf32, #tpu.memory_space<vmem>>, vector<1x768xf32>
    %22 = vector.broadcast %21 : vector<1x768xf32> to vector<8x768xf32>
    %23 = arith.mulf %20, %22 : vector<8x768xf32>
    %cst_25 = arith.constant dense<0.000000e+00> : vector<8xf32>
    %24 = vector.multi_reduction <add>, %23, %cst_25 [1] : vector<8x768xf32> to vector<8xf32>
    %25 = vector.shape_cast %24 : vector<8xf32> to vector<8x1xf32>
    %cst_26 = arith.constant 0.001953125 : f32
    %26 = vector.broadcast %cst_26 : f32 to vector<8x1xf32>
    %27 = arith.mulf %25, %26 : vector<8x1xf32>
    %28 = vector.broadcast %27 : vector<8x1xf32> to vector<8x768xf32>
    %29 = arith.subf %20, %28 : vector<8x768xf32>
    %30 = arith.mulf %29, %29 : vector<8x768xf32>
    %31 = vector.broadcast %21 : vector<1x768xf32> to vector<8x768xf32>
    %32 = arith.mulf %30, %31 : vector<8x768xf32>
    %cst_27 = arith.constant dense<0.000000e+00> : vector<8xf32>
    %33 = vector.multi_reduction <add>, %32, %cst_27 [1] : vector<8x768xf32> to vector<8xf32>
    %34 = vector.shape_cast %33 : vector<8xf32> to vector<8x1xf32>
    %cst_28 = arith.constant 0.001953125 : f32
    %35 = vector.broadcast %cst_28 : f32 to vector<8x1xf32>
    %36 = arith.mulf %34, %35 : vector<8x1xf32>
    %c0_29 = arith.constant 0 : index
    %c0_30 = arith.constant 0 : index
    %37 = vector.load %arg2[%c0_29, %c0_30] : memref<8x1xf32, #tpu.memory_space<vmem>>, vector<8x1xf32>
    %cst_31 = arith.constant 1.000000e-03 : f32
    %38 = vector.broadcast %cst_31 : f32 to vector<8x1xf32>
    %39 = arith.addf %36, %38 : vector<8x1xf32>
    %40 = math.rsqrt %39 : vector<8x1xf32>
    %41 = arith.mulf %37, %40 : vector<8x1xf32>
    %42 = vector.broadcast %41 : vector<8x1xf32> to vector<8x768xf32>
    %43 = arith.mulf %29, %42 : vector<8x768xf32>
    %c0_32 = arith.constant 0 : index
    %c0_33 = arith.constant 0 : index
    %44 = vector.load %arg3[%c0_32, %c0_33] : memref<8x1xf32, #tpu.memory_space<vmem>>, vector<8x1xf32>
    %45 = vector.broadcast %44 : vector<8x1xf32> to vector<8x768xf32>
    %46 = arith.addf %43, %45 : vector<8x768xf32>
    %cst_34 = arith.constant 0.000000e+00 : f32
    %47 = vector.broadcast %cst_34 : f32 to vector<8x768xf32>
    %48 = arith.maximumf %46, %47 : vector<8x768xf32>
    %49 = arith.truncf %48 : vector<8x768xf32> to vector<8x768xbf16>
    %c0_35 = arith.constant 0 : index
    %c0_36 = arith.constant 0 : index
    %50 = vector.load %arg5[%c0_35, %c0_36] : memref<8x768xbf16, #tpu.memory_space<vmem>>, vector<8x768xbf16>
    tpu.vector_store %arg5[%c0_35, %c0_36], %49 {strides = array<i32>} : memref<8x768xbf16, #tpu.memory_space<vmem>>, vector<8x768xbf16>,
    return
  }
}

</mosaic_0001>

<bundles_post_ra>
// kernel: tpu_custom_call.1
= control target key start
LH: loop header
LB: loop body
LE: loop exit
PB: predicated region body
PF: predicated region fallthrough
CT: control target
= control target key end

     0   :  { %10 = vsyncpa [#allocation4], 0  ;;  %s1397_s0 = inlined_call_operand.hbm [shape: bf16[16,896], index: 0, kind: input, shape index: {}]   ;;  %s1398_s1 = inlined_call_operand.vmem [shape: bf16[8,144], index: 1, kind: input, shape index: {}]   ;;  %s1399_s2 = inlined_call_operand.vmem [shape: f32[8,1], index: 2, kind: input, shape index: {}]   ;;  %s1400_s3 = inlined_call_operand.vmem [shape: f32[8,1], index: 3, kind: input, shape index: {}]   ;;  %s1401_s4 = inlined_call_operand.vmem [shape: f32[1,768], index: 4, kind: input, shape index: {}]   ;;  %s1402_s5 = inlined_call_operand.hbm [shape: bf16[8,768], index: 5, kind: output, shape index: {}]  }
   0x1   :  { %11 = vsyncpa [#allocation5], 0  ;;  %s1130_s18 = smov [#allocation3]   ;;  %s1082_s22 = scalar_lea.hbm %s1397_s0, 896 }
   0x2   :  { %s17_s19 = sshll.u32 %s1130_s18, 4  ;;  %p1083_p0 = scmp.ne.s32.totalorder %s1397_s0, %s1082_s22  ;;  %s18_s19 = int_to_ptr.vmem [resolvable:$true] %s17_s19 }
   0x3   :  { %p1086_p1 = scmp.lt.u32.totalorder %s1082_s22, %s1397_s0 }
   0x5   :  { %p1088_p2 = pnand %p1086_p1, %p1083_p0 }
   0x7   :  { %1091 = shalt.err (!%p1088_p2)
}
   0x8   :  { %s1092_s27 = scalar_lea.vmem %s18_s19, 896  ;;  %p1097_p4 = scmp.lt.s32.totalorder %s18_s19, %s18_s19 }
   0x9   :  { %p1093_p3 = scmp.ne.s32.totalorder %s18_s19, %s1092_s27  ;;  %p1098_p5 = scmp.lt.s32.totalorder %s1092_s27, %s1092_s27 }
   0xb   :  { %p1099_p6 = por %p1098_p5, %p1097_p4 }
   0xd   :  { %p1100_p7 = pnand %p1099_p6, %p1093_p3 }
   0xf   :  { %1103 = shalt.err (!%p1100_p7)
}
  0x10   :  { %s1131_s28 = smov 448   ;;  %s1132_s29 = smov 28  }
  0x11   :  { %23 = dma.hbm_to_vmem [thread:$0]  %s1397_s0, 896, %s18_s19, [#allocation4], %s1131_s28, %s1131_s28, %s1132_s29  }
  0x12   :  { %1126 = dma.done.wait [#allocation4], 896  }
  0x13   :  { %1127 = vsyncadd [#allocation4], 4294966400  ;;  %v1061_v0 = vld [vmem:[#allocation3 + $0x4] ss:$28 sps:$4 sm:$0xff]   ;;  %s1133_s7 = smov 127   ;;  %s1134_s0 = smov 126  }
  0x14   :  { %v1063_v1 = vld [vmem:[#allocation3] ss:$28 sps:$4 sm:$0xff]   ;;  %117 = vrot.lane.b32.xlu0 %v1061_v0, %s1133_s7  ;;  %v1064_v2 = vld [vmem:[#allocation3 + $0x8] ss:$28 sps:$4 sm:$0xff]   ;;  %703 = vmatprep.subr.bf16.mxu0 %v1061_v0  ;;  %s1135_s8 = smov 110   ;;  %s1136_s9 = smov 109  }
  0x15   :  { %v1186_v3 = vld [vmem:[#allocation3 + $0xc] ss:$28 sps:$4 sm:$0xff]   ;;  %115 = vrot.lane.b32.xlu1 %v1063_v1, %s1133_s7  ;;  %704 = vmatpush1.bf16.msra.mxu0 %v1063_v1  ;;  %s1137_s10 = smov 108   ;;  %s1138_s11 = smov 92   ;;  %v1209_v4 = vld [vmem:[%s1398_s1] sm:$0xff]  ;;  %vm699_vm0 = vcmask 130048  }
  0x16   :  { %744 = vmatprep.subr.bf16.mxu1 %v1186_v3  ;;  %v1213_v5 = vcombine.high %v1209_v4, %v1209_v4  ;;  %s1139_s14 = smov 91   ;;  %s1140_s1 = smov 90   ;;  %v1225_v6 = vld [vmem:[#allocation3 + $0x10] ss:$28 sps:$4 sm:$0xff]   ;;  %v1070_v8 = vld [vmem:[#allocation3 + $0x18] ss:$28 sps:$4 sm:$0xff]   ;;  %v1327_v56 = vcombine.low %v1209_v4, %v1209_v4 }
  0x17   :  { %745 = vmatpush1.bf16.msra.mxu1 %v1064_v2  ;;  %v1229_v7 = vld [vmem:[#allocation3 + $0x14] ss:$28 sps:$4 sm:$0xff]   ;;  %vm129_vm1 = vcmask 1039360   ;;  %vm199_vm2 = vcmask 1031168   ;;  %vm269_vm3 = vcmask 900096   ;;  %vm339_vm4 = vcmask 891904  }
  0x18   :  { %119 = vrot.lane.b32.xlu0 %v1064_v2, %s1133_s7  ;;  %1037 = vmatprep.mubr.msk.bf16.mxu0 %vm699_vm0, %v1213_v5  ;;  %v1071_v9 = vld [vmem:[#allocation3 + $0x18] ss:$28 sps:$4 sm:$0xff]   ;;  %vm409_vm5 = vcmask 883712   ;;  %vm479_vm6 = vcmask 752640   ;;  %vm549_vm7 = vcmask 744448   ;;  %vm619_vm8 = vcmask 736256  }
  0x19   :  { %187 = vrot.lane.b32.xlu1 %v1061_v0, %s1134_s0  ;;  %1038 = vmatprep.mubr.msk.bf16.mxu1 %vm699_vm0, %v1213_v5  ;;  %v1072_v10 = vld [vmem:[#allocation3 + $0x18] ss:$28 sps:$4 sm:$0xff]  }
  0x1a   :  { %v1073_v11 = vld [vmem:[#allocation3 + $0x18] ss:$28 sps:$4 sm:$0xff]  }
  0x1b   :  { %v1074_v12 = vld [vmem:[#allocation3 + $0x18] ss:$28 sps:$4 sm:$0xff]  }
  0x1c   :  { %189 = vrot.lane.b32.xlu0 %v1064_v2, %s1134_s0  ;;  %v1075_v13 = vld [vmem:[#allocation3 + $0x18] ss:$28 sps:$4 sm:$0xff]  }
  0x1d   :  { %185 = vrot.lane.b32.xlu1 %v1063_v1, %s1134_s0  ;;  %v1076_v14 = vld [vmem:[#allocation3 + $0x18] ss:$28 sps:$4 sm:$0xff]  }
  0x1e   :  { %v1077_v15 = vld [vmem:[#allocation3 + $0x18] ss:$28 sps:$4 sm:$0xff]  }
  0x20   :  { %257 = vrot.lane.b32.xlu0 %v1061_v0, %s1135_s8 }
  0x21   :  { %259 = vrot.lane.b32.xlu1 %v1064_v2, %s1135_s8 }
  0x24   :  { %255 = vrot.lane.b32.xlu0 %v1063_v1, %s1135_s8 }
  0x25   :  { %327 = vrot.lane.b32.xlu1 %v1061_v0, %s1136_s9 }
  0x28   :  { %329 = vrot.lane.b32.xlu0 %v1064_v2, %s1136_s9 }
  0x29   :  { %325 = vrot.lane.b32.xlu1 %v1063_v1, %s1136_s9 }
  0x2c   :  { %397 = vrot.lane.b32.xlu0 %v1061_v0, %s1137_s10 }
  0x2d   :  { %399 = vrot.lane.b32.xlu1 %v1064_v2, %s1137_s10 }
  0x30   :  { %395 = vrot.lane.b32.xlu0 %v1063_v1, %s1137_s10 }
  0x31   :  { %467 = vrot.lane.b32.xlu1 %v1061_v0, %s1138_s11 }
  0x34   :  { %469 = vrot.lane.b32.xlu0 %v1064_v2, %s1138_s11 }
  0x35   :  { %465 = vrot.lane.b32.xlu1 %v1063_v1, %s1138_s11 }
  0x38   :  { %537 = vrot.lane.b32.xlu0 %v1061_v0, %s1139_s14 }
  0x39   :  { %539 = vrot.lane.b32.xlu1 %v1064_v2, %s1139_s14 }
  0x3c   :  { %535 = vrot.lane.b32.xlu0 %v1063_v1, %s1139_s14 }
  0x3d   :  { %607 = vrot.lane.b32.xlu1 %v1061_v0, %s1140_s1 }
  0x40   :  { %609 = vrot.lane.b32.xlu0 %v1064_v2, %s1140_s1 }
  0x41   :  { %605 = vrot.lane.b32.xlu1 %v1063_v1, %s1140_s1 }
  0x44   :  { %121 = vrot.lane.b32.xlu0 %v1186_v3, %s1133_s7 }
  0x45   :  { %123 = vrot.lane.b32.xlu1 %v1225_v6, %s1133_s7 }
  0x48   :  { %125 = vrot.lane.b32.xlu0 %v1229_v7, %s1133_s7 }
  0x49   :  { %127 = vrot.lane.b32.xlu1 %v1070_v8, %s1133_s7 }
  0x4c   :  { %191 = vrot.lane.b32.xlu0 %v1186_v3, %s1134_s0 }
  0x4d   :  { %193 = vrot.lane.b32.xlu1 %v1225_v6, %s1134_s0 }
  0x50   :  { %195 = vrot.lane.b32.xlu0 %v1229_v7, %s1134_s0 }
  0x51   :  { %197 = vrot.lane.b32.xlu1 %v1071_v9, %s1134_s0 }
  0x54   :  { %261 = vrot.lane.b32.xlu0 %v1186_v3, %s1135_s8 }
  0x55   :  { %263 = vrot.lane.b32.xlu1 %v1225_v6, %s1135_s8 }
  0x58   :  { %265 = vrot.lane.b32.xlu0 %v1229_v7, %s1135_s8 }
  0x59   :  { %267 = vrot.lane.b32.xlu1 %v1072_v10, %s1135_s8 }
  0x5c   :  { %331 = vrot.lane.b32.xlu0 %v1186_v3, %s1136_s9 }
  0x5d   :  { %333 = vrot.lane.b32.xlu1 %v1225_v6, %s1136_s9 }
  0x60   :  { %335 = vrot.lane.b32.xlu0 %v1229_v7, %s1136_s9 }
  0x61   :  { %337 = vrot.lane.b32.xlu1 %v1073_v11, %s1136_s9 }
  0x64   :  { %401 = vrot.lane.b32.xlu0 %v1186_v3, %s1137_s10 }
  0x65   :  { %403 = vrot.lane.b32.xlu1 %v1225_v6, %s1137_s10 }
  0x68   :  { %405 = vrot.lane.b32.xlu0 %v1229_v7, %s1137_s10 }
  0x69   :  { %407 = vrot.lane.b32.xlu1 %v1074_v12, %s1137_s10 }
  0x6c   :  { %471 = vrot.lane.b32.xlu0 %v1186_v3, %s1138_s11 }
  0x6d   :  { %473 = vrot.lane.b32.xlu1 %v1225_v6, %s1138_s11 }
  0x70   :  { %475 = vrot.lane.b32.xlu0 %v1229_v7, %s1138_s11 }
  0x71   :  { %477 = vrot.lane.b32.xlu1 %v1075_v13, %s1138_s11 }
  0x74   :  { %541 = vrot.lane.b32.xlu0 %v1186_v3, %s1139_s14 }
  0x75   :  { %543 = vrot.lane.b32.xlu1 %v1225_v6, %s1139_s14 }
  0x78   :  { %545 = vrot.lane.b32.xlu0 %v1229_v7, %s1139_s14 }
  0x79   :  { %547 = vrot.lane.b32.xlu1 %v1076_v14, %s1139_s14 }
  0x7c   :  { %611 = vrot.lane.b32.xlu0 %v1186_v3, %s1140_s1 }
  0x7d   :  { %613 = vrot.lane.b32.xlu1 %v1225_v6, %s1140_s1 }
  0x80   :  { %615 = vrot.lane.b32.xlu0 %v1229_v7, %s1140_s1 }
  0x81   :  { %617 = vrot.lane.b32.xlu1 %v1077_v15, %s1140_s1 }
  0x86   :  { %v118_v16 = vpop.permute.xlu0 %117 }
  0x87   :  { %v116_v17 = vpop.permute.xlu1 %115 }
  0x88   :  { %v130_v21 = vsel %vm129_vm1, %v116_v17, %v118_v16 }
  0x8a   :  { %v1285_v18 = vpop.permute.xlu0 %119 }
  0x8b   :  { %v188_v19 = vpop.permute.xlu1 %187  ;;  %v131_v20 = vsel %vm129_vm1, %v118_v16, %v1285_v18 }
  0x8c   :  { %705 = vmatprep.subr.bf16.mxu0 %v131_v20 }
  0x8d   :  { %706 = vmatpush1.bf16.msra.mxu0 %v130_v21 }
  0x8e   :  { %v1290_v22 = vpop.permute.xlu0 %189 }
  0x8f   :  { %v186_v23 = vpop.permute.xlu1 %185  ;;  %v201_v24 = vsel %vm199_vm2, %v188_v19, %v1290_v22 }
  0x90   :  { %707 = vmatprep.subr.bf16.mxu0 %v201_v24  ;;  %v200_v25 = vsel %vm199_vm2, %v186_v23, %v188_v19 }
  0x91   :  { %708 = vmatpush1.bf16.msra.mxu0 %v200_v25 }
  0x92   :  { %v258_v26 = vpop.permute.xlu0 %257 }
  0x93   :  { %v1295_v27 = vpop.permute.xlu1 %259 }
  0x94   :  { %v271_v28 = vsel %vm269_vm3, %v258_v26, %v1295_v27 }
  0x95   :  { %709 = vmatprep.subr.bf16.mxu0 %v271_v28 }
  0x96   :  { %v256_v29 = vpop.permute.xlu0 %255 }
  0x97   :  { %v328_v30 = vpop.permute.xlu1 %327  ;;  %v270_v31 = vsel %vm269_vm3, %v256_v29, %v258_v26 }
  0x98   :  { %710 = vmatpush1.bf16.msra.mxu0 %v270_v31 }
  0x9a   :  { %v1300_v32 = vpop.permute.xlu0 %329 }
  0x9b   :  { %v326_v33 = vpop.permute.xlu1 %325  ;;  %v341_v34 = vsel %vm339_vm4, %v328_v30, %v1300_v32 }
  0x9c   :  { %711 = vmatprep.subr.bf16.mxu0 %v341_v34  ;;  %v340_v35 = vsel %vm339_vm4, %v326_v33, %v328_v30 }
  0x9d   :  { %712 = vmatpush1.bf16.msra.mxu0 %v340_v35 }
  0x9e   :  { %v398_v36 = vpop.permute.xlu0 %397 }
  0x9f   :  { %v1305_v37 = vpop.permute.xlu1 %399 }
  0xa0   :  { %v411_v38 = vsel %vm409_vm5, %v398_v36, %v1305_v37 }
  0xa1   :  { %713 = vmatprep.subr.bf16.mxu0 %v411_v38 }
  0xa2   :  { %v396_v39 = vpop.permute.xlu0 %395 }
  0xa3   :  { %v468_v40 = vpop.permute.xlu1 %467  ;;  %v410_v41 = vsel %vm409_vm5, %v396_v39, %v398_v36 }
  0xa4   :  { %714 = vmatpush1.bf16.msra.mxu0 %v410_v41 }
  0xa6   :  { %v1310_v42 = vpop.permute.xlu0 %469 }
  0xa7   :  { %v466_v43 = vpop.permute.xlu1 %465  ;;  %v481_v44 = vsel %vm479_vm6, %v468_v40, %v1310_v42 }
  0xa8   :  { %715 = vmatprep.subr.bf16.mxu0 %v481_v44  ;;  %v480_v45 = vsel %vm479_vm6, %v466_v43, %v468_v40 }
  0xa9   :  { %716 = vmatpush1.bf16.msra.mxu0 %v480_v45 }
  0xaa   :  { %v538_v46 = vpop.permute.xlu0 %537 }
  0xab   :  { %v1315_v47 = vpop.permute.xlu1 %539 }
  0xac   :  { %v551_v48 = vsel %vm549_vm7, %v538_v46, %v1315_v47 }
  0xad   :  { %717 = vmatprep.subr.bf16.mxu0 %v551_v48 }
  0xae   :  { %v536_v49 = vpop.permute.xlu0 %535 }
  0xaf   :  { %v608_v50 = vpop.permute.xlu1 %607  ;;  %v550_v51 = vsel %vm549_vm7, %v536_v49, %v538_v46 }
  0xb0   :  { %718 = vmatpush1.bf16.msra.mxu0 %v550_v51 }
  0xb2   :  { %v1320_v52 = vpop.permute.xlu0 %609 }
  0xb3   :  { %v606_v53 = vpop.permute.xlu1 %605  ;;  %v621_v54 = vsel %vm619_vm8, %v608_v50, %v1320_v52 }
  0xb4   :  { %719 = vmatprep.subr.bf16.mxu0 %v621_v54  ;;  %v620_v55 = vsel %vm619_vm8, %v606_v53, %v608_v50 }
  0xb5   :  { %720 = vmatpush1.bf16.msra.mxu0 %v620_v55 }
  0xb6   :  { %v122_v57 = vpop.permute.xlu0 %121  ;;  %785 = vmatprep.subr.bf16.mxu0 %v1229_v7 }
  0xb7   :  { %v124_v58 = vpop.permute.xlu1 %123  ;;  %v132_v59 = vsel %vm129_vm1, %v1285_v18, %v122_v57 }
  0xb8   :  { %v133_v60 = vsel %vm129_vm1, %v122_v57, %v124_v58  ;;  %736 = vmatmul.mubr.bf16.vlgmr.msra.gmra.mrb[0].mxu0 %v1327_v56 }
  0xb9   :  { %746 = vmatprep.subr.bf16.mxu1 %v133_v60  ;;  %786 = vmatpush1.bf16.msra.mxu0 %v1225_v6 }
  0xba   :  { %747 = vmatpush1.bf16.msra.mxu1 %v132_v59  ;;  %v126_v61 = vpop.permute.xlu0 %125  ;;  %1039 = vmatprep.mubr.msk.bf16.mxu0 %vm699_vm0, %v1213_v5  ;;  %v828_v59 = vlaneseq }
  0xbb   :  { %v134_v62 = vsel %vm129_vm1, %v124_v58, %v126_v61  ;;  %v128_v63 = vpop.permute.xlu1 %127 }
  0xbc   :  { %v135_v0 = vsel %vm129_vm1, %v126_v61, %v128_v63  ;;  %v829_v60 = vshrl.u32 %v828_v59, 7  ;;  %v913_v59 = vld [vmem:[%s1400_s3] sm:$0xff] }
  0xbd   :  { %787 = vmatprep.subr.bf16.mxu0 %v135_v0 }
  0xbe   :  { %788 = vmatpush1.bf16.msra.mxu0 %v134_v62  ;;  %v192_v1 = vpop.permute.xlu0 %191  ;;  %v830_v61 = vsub.s32 0, %v829_v60  ;;  %v834_v62 = vsub.s32 1, %v829_v60 }
  0xbf   :  { %v194_v2 = vpop.permute.xlu1 %193  ;;  %v202_v3 = vsel %vm199_vm2, %v1290_v22, %v192_v1 }
  0xc0   :  { %v203_v4 = vsel %vm199_vm2, %v192_v1, %v194_v2 }
  0xc1   :  { %748 = vmatprep.subr.bf16.mxu1 %v203_v4 }
  0xc2   :  { %749 = vmatpush1.bf16.msra.mxu1 %v202_v3  ;;  %v196_v6 = vpop.permute.xlu0 %195 }
  0xc3   :  { %v204_v7 = vsel %vm199_vm2, %v194_v2, %v196_v6  ;;  %v198_v5 = vpop.permute.xlu1 %197 }
  0xc4   :  { %v205_v8 = vsel %vm199_vm2, %v196_v6, %v198_v5 }
  0xc5   :  { %789 = vmatprep.subr.bf16.mxu0 %v205_v8  ;;  %v838_v8 = vsub.s32 2, %v829_v60 }
  0xc6   :  { %790 = vmatpush1.bf16.msra.mxu0 %v204_v7  ;;  %v262_v9 = vpop.permute.xlu0 %261 }
  0xc7   :  { %v264_v10 = vpop.permute.xlu1 %263  ;;  %v272_v11 = vsel %vm269_vm3, %v1295_v27, %v262_v9 }
  0xc8   :  { %v273_v12 = vsel %vm269_vm3, %v262_v9, %v264_v10  ;;  %v842_v9 = vsub.s32 3, %v829_v60 }
  0xc9   :  { %750 = vmatprep.subr.bf16.mxu1 %v273_v12  ;;  %v850_v12 = vsub.s32 5, %v829_v60 }
  0xca   :  { %751 = vmatpush1.bf16.msra.mxu1 %v272_v11  ;;  %v266_v13 = vpop.permute.xlu0 %265 }
  0xcb   :  { %v274_v14 = vsel %vm269_vm3, %v264_v10, %v266_v13  ;;  %v268_v15 = vpop.permute.xlu1 %267  ;;  %v846_v10 = vsub.s32 4, %v829_v60 }
  0xcc   :  { %v275_v16 = vsel %vm269_vm3, %v266_v13, %v268_v15 }
  0xcd   :  { %791 = vmatprep.subr.bf16.mxu0 %v275_v16 }
  0xce   :  { %792 = vmatpush1.bf16.msra.mxu0 %v274_v14  ;;  %v332_v17 = vpop.permute.xlu0 %331 }
  0xcf   :  { %v334_v18 = vpop.permute.xlu1 %333  ;;  %v342_v19 = vsel %vm339_vm4, %v1300_v32, %v332_v17 }
  0xd0   :  { %v343_v20 = vsel %vm339_vm4, %v332_v17, %v334_v18 }
  0xd1   :  { %752 = vmatprep.subr.bf16.mxu1 %v343_v20 }
  0xd2   :  { %753 = vmatpush1.bf16.msra.mxu1 %v342_v19  ;;  %v336_v21 = vpop.permute.xlu0 %335 }
  0xd3   :  { %v344_v22 = vsel %vm339_vm4, %v334_v18, %v336_v21  ;;  %v338_v23 = vpop.permute.xlu1 %337 }
  0xd4   :  { %v345_v24 = vsel %vm339_vm4, %v336_v21, %v338_v23 }
  0xd5   :  { %793 = vmatprep.subr.bf16.mxu0 %v345_v24 }
  0xd6   :  { %794 = vmatpush1.bf16.msra.mxu0 %v344_v22  ;;  %v402_v25 = vpop.permute.xlu0 %401 }
  0xd7   :  { %v404_v26 = vpop.permute.xlu1 %403  ;;  %v412_v27 = vsel %vm409_vm5, %v1305_v37, %v402_v25 }
  0xd8   :  { %v413_v28 = vsel %vm409_vm5, %v402_v25, %v404_v26 }
  0xd9   :  { %754 = vmatprep.subr.bf16.mxu1 %v413_v28 }
  0xda   :  { %755 = vmatpush1.bf16.msra.mxu1 %v412_v27  ;;  %v406_v29 = vpop.permute.xlu0 %405 }
  0xdb   :  { %v414_v30 = vsel %vm409_vm5, %v404_v26, %v406_v29  ;;  %v408_v31 = vpop.permute.xlu1 %407 }
  0xdc   :  { %v415_v32 = vsel %vm409_vm5, %v406_v29, %v408_v31 }
  0xdd   :  { %795 = vmatprep.subr.bf16.mxu0 %v415_v32 }
  0xde   :  { %796 = vmatpush1.bf16.msra.mxu0 %v414_v30  ;;  %v472_v33 = vpop.permute.xlu0 %471 }
  0xdf   :  { %v474_v34 = vpop.permute.xlu1 %473  ;;  %v482_v35 = vsel %vm479_vm6, %v1310_v42, %v472_v33 }
  0xe0   :  { %v483_v36 = vsel %vm479_vm6, %v472_v33, %v474_v34 }
  0xe1   :  { %756 = vmatprep.subr.bf16.mxu1 %v483_v36 }
  0xe2   :  { %757 = vmatpush1.bf16.msra.mxu1 %v482_v35  ;;  %v476_v37 = vpop.permute.xlu0 %475 }
  0xe3   :  { %v484_v38 = vsel %vm479_vm6, %v474_v34, %v476_v37  ;;  %v478_v39 = vpop.permute.xlu1 %477 }
  0xe4   :  { %v485_v40 = vsel %vm479_vm6, %v476_v37, %v478_v39 }
  0xe5   :  { %797 = vmatprep.subr.bf16.mxu0 %v485_v40 }
  0xe6   :  { %798 = vmatpush1.bf16.msra.mxu0 %v484_v38  ;;  %v542_v41 = vpop.permute.xlu0 %541 }
  0xe7   :  { %v544_v43 = vpop.permute.xlu1 %543  ;;  %v552_v44 = vsel %vm549_vm7, %v1315_v47, %v542_v41 }
  0xe8   :  { %v553_v45 = vsel %vm549_vm7, %v542_v41, %v544_v43 }
  0xe9   :  { %758 = vmatprep.subr.bf16.mxu1 %v553_v45 }
  0xea   :  { %759 = vmatpush1.bf16.msra.mxu1 %v552_v44  ;;  %v546_v42 = vpop.permute.xlu0 %545 }
  0xeb   :  { %v554_v46 = vsel %vm549_vm7, %v544_v43, %v546_v42  ;;  %v548_v48 = vpop.permute.xlu1 %547 }
  0xec   :  { %v555_v49 = vsel %vm549_vm7, %v546_v42, %v548_v48 }
  0xed   :  { %799 = vmatprep.subr.bf16.mxu0 %v555_v49 }
  0xee   :  { %800 = vmatpush1.bf16.msra.mxu0 %v554_v46  ;;  %v612_v50 = vpop.permute.xlu0 %611 }
  0xef   :  { %v614_v51 = vpop.permute.xlu1 %613  ;;  %v622_v53 = vsel %vm619_vm8, %v1320_v52, %v612_v50  ;;  %v826_v52 = vld [vmem:[%s1401_s4] sm:$0x3f] }
  0xf0   :  { %v623_v54 = vsel %vm619_vm8, %v612_v50, %v614_v51  ;;  %v831_v63 = vrot.slane %v826_v52, %v830_v61  ;;  %v835_v0 = vrot.slane %v826_v52, %v834_v62  ;;  %v843_v11 = vrot.slane %v826_v52, %v842_v9  ;;  %v898_v62 = vld [vmem:[%s1399_s2] sm:$0xff]  ;;  %s1142_s2 = smov [#allocation6]  }
  0xf1   :  { %760 = vmatprep.subr.bf16.mxu1 %v623_v54  ;;  %v847_v16 = vrot.slane %v826_v52, %v846_v10  ;;  %v851_v19 = vrot.slane %v826_v52, %v850_v12  ;;  %s964_s3 = sshll.u32 %s1142_s2, 4  ;;  %s965_s3 = int_to_ptr.vmem [resolvable:$true] %s964_s3 }
  0xf2   :  { %761 = vmatpush1.bf16.msra.mxu1 %v622_v53  ;;  %v616_v47 = vpop.permute.xlu0 %615  ;;  %s1104_s20 = scalar_lea.vmem %s965_s3, 384  ;;  %p1109_p9 = scmp.lt.s32.totalorder %s965_s3, %s965_s3 }
  0xf3   :  { %v624_v55 = vsel %vm619_vm8, %v614_v51, %v616_v47  ;;  %v618_v57 = vpop.permute.xlu1 %617  ;;  %p1105_p8 = scmp.ne.s32.totalorder %s965_s3, %s1104_s20  ;;  %p1110_p10 = scmp.lt.s32.totalorder %s1104_s20, %s1104_s20 }
  0xf4   :  { %v625_v58 = vsel %vm619_vm8, %v616_v47, %v618_v57 }
  0xf5   :  { %777 = vmatmul.mubr.bf16.vlgmr.msra.gmra.mrb[0].mxu1 %v1327_v56  ;;  %801 = vmatprep.subr.bf16.mxu0 %v625_v58  ;;  %v1141_v58 = vmov 0   ;;  %p1111_p11 = por %p1110_p10, %p1109_p9 }
  0xf6   :  { %802 = vmatpush1.bf16.msra.mxu0 %v624_v55  ;;  %1059 = vset.pattern.permute.xlu0 %v1141_v58 }
  0xf7   :  { %1060 = vset.pattern.permute.xlu1 %v1141_v58  ;;  %p1112_p12 = pnand %p1111_p11, %p1105_p8 }
  0xf9   :  { %818 = vmatmul.mubr.bf16.vlgmr.msra.gmra.mrb[4].mxu0 %v1327_v56  ;;  %v839_v56 = vrot.slane %v826_v52, %v838_v8 }
 0x18b   :  { %v737_v1 = vpop.f32.mrb[0].mxu0 }
 0x18c   :  { %v858_v2 = vmul.f32 %v831_v63, %v737_v1  ;;  %v739_v3 = vpop.f32.mrb[1].mxu0 }
 0x18d   :  { %v859_v4 = vmul.f32 %v835_v0, %v739_v3  ;;  %v741_v6 = vpop.f32.mrb[2].mxu0 }
 0x18e   :  { %v742_v7 = vpop.f32.mrb[3].mxu0 }
 0x18f   :  { %v864_v5 = vadd.f32 %v859_v4, %v858_v2 }
 0x1c8   :  { %v778_v13 = vpop.f32.mrb[0].mxu1 }
 0x1c9   :  { %v860_v14 = vmul.f32 %v839_v56, %v778_v13  ;;  %v780_v15 = vpop.f32.mrb[1].mxu1 }
 0x1ca   :  { %v861_v17 = vmul.f32 %v843_v11, %v780_v15  ;;  %v782_v18 = vpop.f32.mrb[2].mxu1 }
 0x1cb   :  { %v865_v20 = vadd.f32 %v864_v5, %v860_v14  ;;  %v783_v21 = vpop.f32.mrb[3].mxu1 }
 0x1cc   :  { %v819_v22 = vpop.f32.mrb[4].mxu0 }
 0x1cd   :  { %v866_v23 = vadd.f32 %v865_v20, %v861_v17  ;;  %v862_v24 = vmul.f32 %v847_v16, %v819_v22  ;;  %v821_v25 = vpop.f32.mrb[5].mxu0 }
 0x1ce   :  { %v863_v26 = vmul.f32 %v851_v19, %v821_v25  ;;  %v823_v27 = vpop.f32.mrb[6].mxu0 }
 0x1cf   :  { %v824_v28 = vpop.f32.mrb[7].mxu0  ;;  %v867_v29 = vadd.f32 %v866_v23, %v862_v24 }
 0x1d1   :  { %v868_v30 = vadd.f32 %v867_v29, %v863_v26 }
 0x1d3   :  { %869 = vadd.xlane.f32.xlu0 %v868_v30 }
 0x260   :  { %v870_v31 = vpop.xlane.xlu0 %869 }
 0x261   :  { %v871_v32 = vmul.f32 0.001953125, %v870_v31 }
 0x263   :  { %v872_v33 = vsub.f32 %v737_v1, %v871_v32  ;;  %v873_v34 = vsub.f32 %v739_v3, %v871_v32  ;;  %v874_v35 = vsub.f32 %v778_v13, %v871_v32  ;;  %v875_v36 = vsub.f32 %v780_v15, %v871_v32 }
 0x264   :  { %v876_v37 = vsub.f32 %v819_v22, %v871_v32  ;;  %v877_v41 = vsub.f32 %v821_v25, %v871_v32 }
 0x265   :  { %v878_v38 = vmul.f32 %v872_v33, %v872_v33  ;;  %v879_v39 = vmul.f32 %v873_v34, %v873_v34  ;;  %v880_v40 = vmul.f32 %v874_v35, %v874_v35  ;;  %v881_v43 = vmul.f32 %v875_v36, %v875_v36 }
 0x266   :  { %v882_v42 = vmul.f32 %v876_v37, %v876_v37  ;;  %v883_v49 = vmul.f32 %v877_v41, %v877_v41 }
 0x267   :  { %v884_v44 = vmul.f32 %v878_v38, %v831_v63  ;;  %v885_v45 = vmul.f32 %v879_v39, %v835_v0  ;;  %v886_v46 = vmul.f32 %v880_v40, %v839_v56  ;;  %v887_v50 = vmul.f32 %v881_v43, %v843_v11 }
 0x268   :  { %v888_v53 = vmul.f32 %v882_v42, %v847_v16  ;;  %v889_v47 = vmul.f32 %v883_v49, %v851_v19 }
 0x269   :  { %v890_v48 = vadd.f32 %v885_v45, %v884_v44 }
 0x26b   :  { %v891_v51 = vadd.f32 %v890_v48, %v886_v46 }
 0x26d   :  { %v892_v54 = vadd.f32 %v891_v51, %v887_v50 }
 0x26f   :  { %v893_v55 = vadd.f32 %v892_v54, %v888_v53 }
 0x271   :  { %v894_v57 = vadd.f32 %v893_v55, %v889_v47 }
 0x273   :  { %895 = vadd.xlane.f32.xlu1 %v894_v57 }
 0x284   :  { %916 = vperm.xlu1 %1060, %v913_v59  }
 0x300   :  { %v896_v60 = vpop.xlane.xlu1 %895 }
 0x301   :  { %v897_v61 = vmul.f32 0.001953125, %v896_v60 }
 0x303   :  { %v899_v52 = vadd.f32 0.001, %v897_v61 }
 0x304   :  { %v917_v2 = vpop.permute.xlu1 %916 }
 0x305   :  { %1080 = vrsqrt.f32 %v899_v52 }
 0x30f   :  { %v1081_v63 = vpop.eup %1080 }
 0x310   :  { %v901_v0 = vmul.f32 %v1081_v63, %v898_v62 }
 0x312   :  { %904 = vperm.xlu0 %1059, %v901_v0  }
 0x391   :  { %v905_v1 = vpop.permute.xlu0 %904 }
 0x392   :  { %v907_v3 = vmul.f32 %v905_v1, %v872_v33  ;;  %v908_v4 = vmul.f32 %v905_v1, %v873_v34  ;;  %v909_v6 = vmul.f32 %v905_v1, %v874_v35  ;;  %v910_v7 = vmul.f32 %v905_v1, %v875_v36 }
 0x393   :  { %v911_v5 = vmul.f32 %v905_v1, %v876_v37  ;;  %v912_v8 = vmul.f32 %v905_v1, %v877_v41 }
 0x394   :  { %v919_v9 = vadd.f32 %v917_v2, %v907_v3  ;;  %v920_v56 = vadd.f32 %v917_v2, %v908_v4  ;;  %v921_v10 = vadd.f32 %v917_v2, %v909_v6  ;;  %v922_v11 = vadd.f32 %v917_v2, %v910_v7 }
 0x395   :  { %v923_v12 = vadd.f32 %v917_v2, %v911_v5  ;;  %v924_v13 = vadd.f32 %v917_v2, %v912_v8 }
 0x396   :  { %v925_v14 = vmax.f32 %v919_v9, 0.0  ;;  %v926_v15 = vmax.f32 %v920_v56, 0.0  ;;  %v927_v16 = vmax.f32 %v921_v10, 0.0  ;;  %v928_v17 = vmax.f32 %v922_v11, 0.0 }
 0x397   :  { %v929_v18 = vmax.f32 %v923_v12, 0.0  ;;  %v930_v19 = vmax.f32 %v924_v13, 0.0 }
 0x398   :  { %v1043_v20 = vpack.c.bf16 %v926_v15, %v925_v14  ;;  %v1044_v21 = vpack.c.bf16 %v928_v17, %v927_v16 }
 0x399   :  { %v1045_v22 = vpack.c.bf16 %v930_v19, %v929_v18 }
 0x39a   :  { %955 = vst [vmem:[#allocation6] sm:$0xff] %v1043_v20  ;;  %956 = vst [vmem:[#allocation6 + $0x8] sm:$0xff] %v1044_v21 }
 0x39b   :  { %957 = vst [vmem:[#allocation6 + $0x10] sm:$0xff] %v1045_v22 }
 0x39c   :  { %1115 = shalt.err (!%p1112_p12)
}
 0x39d   :  { %s1116_s23 = scalar_lea.hbm %s1402_s5, 384 }
 0x39e   :  { %p1117_p13 = scmp.ne.s32.totalorder %s1402_s5, %s1116_s23  ;;  %p1120_p0 = scmp.lt.u32.totalorder %s1116_s23, %s1402_s5 }
 0x3a0   :  { %p1122_p1 = pnand %p1120_p0, %p1117_p13 }
 0x3a2   :  { %1125 = shalt.err (!%p1122_p1)
}
 0x3a3   :  { %967 = dma.vmem_to_hbm [thread:$0]  %s965_s3, 384, %s1402_s5, [#allocation5]  }
 0x3a4   :  { %1128 = dma.done.wait [#allocation5], 384  }
 0x3a5   :  { %1129 = vsyncadd [#allocation5], 4294966912 }
 0x3a6   :  { %971 = vsyncpa [#allocation4], 1 }
 0x3a7   :  { %972 = vsyncpa [#allocation5], 1 }

</bundles_post_ra>
